<compile_context>
chip_gen: v7x
topology: tpu7x:2x2x1
jax: 0.10.0
libtpu: 0.0.40
codegen_flags: <defaults>
</compile_context>

<pallas_src>
import jax
import jax.numpy as jnp
from jax.experimental import pallas as pl
from jax.experimental.pallas import tpu as pltpu

HIDDEN = 32  # constant.hidden_size


def _scores_kernel(u_ref, c_ref, state_ref, wu_ref, wc_ref, b_ref, out_ref):
    TB, L, S, H = state_ref.shape

    # Activations / weights are small; compute the Linear in f32 on the MXU.
    u = u_ref[...].reshape(TB * L, H).astype(jnp.float32)
    c = c_ref[...].reshape(TB * L, H).astype(jnp.float32)
    wu = wu_ref[...].astype(jnp.float32)
    wc = wc_ref[...].astype(jnp.float32)
    bias = b_ref[...].astype(jnp.float32)                       # (1, H)

    # Linear(2H -> H) without the concat:  x @ W  ==  u @ W_u + c @ W_c.  (MXU)
    proj = (jnp.dot(u, wu, preferred_element_type=jnp.float32)
            + jnp.dot(c, wc, preferred_element_type=jnp.float32)
            + bias)
    proj = jnp.maximum(proj, 0.0)                               # (TB*L, H) f32

    # scores[n, s] = <state[n, s, :], proj[n, :]>  (contraction over H).
    # Multiply at the state's native width (bf16 VALU on v6e/v7x); accumulate
    # the H-reduction in f32.  For an f32 state this is the plain f32 path.
    state = state_ref[...].reshape(TB * L, S, H)
    if state.dtype == jnp.float32:
        prod = state * proj[:, None, :]
    else:
        prod = state * proj.astype(state.dtype)[:, None, :]
    scores = jnp.sum(prod, axis=-1, dtype=jnp.float32)          # (TB*L, S)

    # LogSoftmax over the state axis (PyTorch dim=2), max-shifted for stability.
    m = jnp.max(scores, axis=-1, keepdims=True)
    shifted = scores - m
    lse = jnp.log(jnp.sum(jnp.exp(shifted), axis=-1, keepdims=True))
    out = (shifted - lse).astype(out_ref.dtype)                 # (TB*L, S)

    if len(out_ref.shape) == 2:
        # Lane-dense output block (TB, L*S): unmasked full-lane stores.
        out_ref[...] = out.reshape(TB, L * S)
    else:
        out_ref[...] = out.reshape(TB, L, S)


def _vmem_budget_and_limit():
    """Generation-aware (pipelined-footprint budget, scoped-VMEM limit).

    v7x has 64 MiB VMEM per TensorCore; v5e/v6e have 128 MiB.  Leave headroom
    for Mosaic internal scratch on top of the budgeted pipeline footprint."""
    cap = None
    try:
        cap = int(pltpu.get_tpu_info().vmem_capacity_bytes)
    except Exception:
        cap = None
    if cap is None:
        cap = 64 * 2**20                      # conservative: smallest per-TC VMEM
    if cap <= 64 * 2**20:                     # v7x-class
        return 40 * 2**20, 48 * 2**20
    return 48 * 2**20, 64 * 2**20             # v5e / v6e (128 MiB parts)


def _per_step_vmem_bytes(tb, L, S, H, act_itemsize, state_itemsize):
    """Full pipelined VMEM footprint for one batch tile (default 2x buffering
    on every stream) plus the in-kernel f32 working set for the reduction when
    the state block is sub-32-bit."""
    state = 2 * tb * L * S * H * state_itemsize
    acts = 2 * 2 * tb * L * H * act_itemsize          # utterance + conversation
    out = 2 * tb * L * S * 4                          # f32 output block
    weights = 2 * (2 * H * H + H) * act_itemsize      # w_u, w_c, bias
    f32_copy = tb * L * S * H * 4 if state_itemsize < 4 else 0
    return state + acts + out + weights + f32_copy


def _pick_block_batch(B, L, S, H, act_itemsize, state_itemsize, budget):
    """Largest divisor of B whose full pipelined footprint fits the budget.
    The grid is a serial loop on single-TC parts, so bigger tiles (fewer grid
    steps) are strictly better once they fit."""
    best = 1
    for tb in range(1, B + 1):
        if B % tb:
            continue
        if _per_step_vmem_bytes(tb, L, S, H, act_itemsize, state_itemsize) > budget:
            continue
        best = tb
    return best


def scores_calculator_forward(state_matrix, utterance_repre, conversation_repre,
                              max_conversation_length, w, b):
    """Pallas implementation of ScoresCalculator.forward
    (teacher=False, softmax_func=LogSoftmax).

    state_matrix:       (B, L, S, H)
    utterance_repre:    (B, T, H)  with T >= L
    conversation_repre: (B, T, H)
    w: (2H, H)   b: (H,)
    returns: (B, L, S) log-softmax scores, float32
    """
    # max_conversation_length defines shapes -> must be a static Python int.
    L = int(max_conversation_length)
    B, _, S, H = state_matrix.shape
    T = utterance_repre.shape[1]
    assert conversation_repre.shape[1] == T and T >= L
    assert w.shape == (2 * H, H)

    # Weight split replaces the concat; pure free slicing of tiny params.
    w_u = w[:H, :]
    w_c = w[H:, :]
    b2 = b.reshape(1, H)

    # Window the first L rows of the activations via BlockSpec (no extra HBM
    # pass).  The (8,128) rule on the second-last block dim requires L % 8 == 0
    # or L == T; otherwise fall back to a wrapper slice.
    if L == T or L % 8 == 0:
        u_in, c_in = utterance_repre, conversation_repre
    else:
        u_in = utterance_repre[:, :L, :]
        c_in = conversation_repre[:, :L, :]

    act_itemsize = jnp.dtype(utterance_repre.dtype).itemsize
    state_itemsize = jnp.dtype(state_matrix.dtype).itemsize

    budget, vmem_limit = _vmem_budget_and_limit()
    TB = _pick_block_batch(B, L, S, H, act_itemsize, state_itemsize, budget)
    NB = B // TB

    # Lane-dense output when possible: S=8 on lanes means masked partial
    # stores; (TB, L*S) with L*S % 128 == 0 gives unmasked full-lane vst.
    lane_dense = ((L * S) % 128 == 0) and (TB == B or TB % 8 == 0)
    if lane_dense:
        out_shape = jax.ShapeDtypeStruct((B, L * S), jnp.float32)
        out_spec = pl.BlockSpec((TB, L * S), lambda i: (i, 0))
    else:
        out_shape = jax.ShapeDtypeStruct((B, L, S), jnp.float32)
        out_spec = pl.BlockSpec((TB, L, S), lambda i: (i, 0, 0))

    grid_spec = pltpu.PrefetchScalarGridSpec(
        num_scalar_prefetch=0,
        grid=(NB,),
        in_specs=[
            pl.BlockSpec((TB, L, H), lambda i: (i, 0, 0)),          # utterance
            pl.BlockSpec((TB, L, H), lambda i: (i, 0, 0)),          # conversation
            pl.BlockSpec((TB, L, S, H), lambda i: (i, 0, 0, 0)),    # state matrix
            pl.BlockSpec((H, H), lambda i: (0, 0)),                 # w_u
            pl.BlockSpec((H, H), lambda i: (0, 0)),                 # w_c
            pl.BlockSpec((1, H), lambda i: (0, 0)),                 # bias
        ],
        out_specs=out_spec,
    )

    out = pl.pallas_call(
        _scores_kernel,
        out_shape=out_shape,
        grid_spec=grid_spec,
        compiler_params=pltpu.CompilerParams(
            dimension_semantics=("parallel",),
            vmem_limit_bytes=vmem_limit,
        ),
    )(u_in, c_in, state_matrix, w_u, w_c, b2)

    if lane_dense:
        out = out.reshape(B, L, S)
    return out


def _reference(state_matrix, utterance_repre, conversation_repre, L, w, b):
    utt_concat = jnp.concatenate(
        (utterance_repre[:, :L, :], conversation_repre[:, :L, :]), axis=2)
    proj = jnp.maximum(utt_concat @ w + b, 0.0)                 # (B, L, H)
    scores = jnp.einsum("blsh,blh->bls", state_matrix, proj)    # (B, L, S)
    return jax.nn.log_softmax(scores, axis=2)


if __name__ == "__main__":
    B, T, L, S, H = 2, 10, 8, 8, HIDDEN

    key = jax.random.PRNGKey(0)
    k_state, k_utt, k_conv, k_w, k_b = jax.random.split(key, 5)

    state_matrix = jax.random.normal(k_state, (B, L, S, H), jnp.float32)
    utterance_repre = jax.random.normal(k_utt, (B, T, H), jnp.float32)
    conversation_repre = jax.random.normal(k_conv, (B, T, H), jnp.float32)

    # Deterministic "Linear(2H -> H)" parameters (synthetic init).
    w = jax.random.normal(k_w, (2 * H, H), jnp.float32) * 0.05
    b = jax.random.normal(k_b, (H,), jnp.float32) * 0.05

    out = scores_calculator_forward(
        state_matrix, utterance_repre, conversation_repre, L, w, b)
    out = jax.block_until_ready(out)

    ref = _reference(state_matrix, utterance_repre, conversation_repre, L, w, b)
    assert out.shape == (B, L, S)
    assert jnp.allclose(out, ref, atol=1e-4, rtol=1e-4)

    print("KERNEL_OK")
</pallas_src>

<mosaic_0001>
module attributes {stable_mosaic.version = 11 : i64} {
  func.func @_scores_kernel(%arg0: i32, %arg1: memref<2x8x32xf32, #tpu.memory_space<vmem>>, %arg2: memref<2x8x32xf32, #tpu.memory_space<vmem>>, %arg3: memref<2x8x8x32xf32, #tpu.memory_space<vmem>>, %arg4: memref<32x32xf32, #tpu.memory_space<vmem>>, %arg5: memref<32x32xf32, #tpu.memory_space<vmem>>, %arg6: memref<1x32xf32, #tpu.memory_space<vmem>>, %arg7: memref<2x8x8xf32, #tpu.memory_space<vmem>>) attributes {dimension_semantics = [#tpu.dimension_semantics<parallel>], iteration_bounds = array<i64: 1>, scalar_prefetch = 0 : i64, scratch_operands = 0 : i64, tpu.core_type = #tpu.core_type<tc>, window_params = [{transform_indices = @transform_0, window_bounds = array<i64: 2, 8, 32>}, {transform_indices = @transform_1, window_bounds = array<i64: 2, 8, 32>}, {transform_indices = @transform_2, window_bounds = array<i64: 2, 8, 8, 32>}, {pipeline_mode = #tpu.pipeline_mode<synchronous>, transform_indices = @transform_3, window_bounds = array<i64: 32, 32>}, {pipeline_mode = #tpu.pipeline_mode<synchronous>, transform_indices = @transform_4, window_bounds = array<i64: 32, 32>}, {pipeline_mode = #tpu.pipeline_mode<synchronous>, transform_indices = @transform_5, window_bounds = array<i64: 1, 32>}, {transform_indices = @transform_6, window_bounds = array<i64: 2, 8, 8>}]} {
    %c0 = arith.constant 0 : index
    %c0_0 = arith.constant 0 : index
    %c0_1 = arith.constant 0 : index
    %0 = vector.load %arg1[%c0, %c0_0, %c0_1] : memref<2x8x32xf32, #tpu.memory_space<vmem>>, vector<2x8x32xf32>
    %1 = vector.shape_cast %0 : vector<2x8x32xf32> to vector<16x32xf32>
    %c0_2 = arith.constant 0 : index
    %c0_3 = arith.constant 0 : index
    %c0_4 = arith.constant 0 : index
    %2 = vector.load %arg2[%c0_2, %c0_3, %c0_4] : memref<2x8x32xf32, #tpu.memory_space<vmem>>, vector<2x8x32xf32>
    %3 = vector.shape_cast %2 : vector<2x8x32xf32> to vector<16x32xf32>
    %c0_5 = arith.constant 0 : index
    %c0_6 = arith.constant 0 : index
    %4 = vector.load %arg4[%c0_5, %c0_6] : memref<32x32xf32, #tpu.memory_space<vmem>>, vector<32x32xf32>
    %c0_7 = arith.constant 0 : index
    %c0_8 = arith.constant 0 : index
    %5 = vector.load %arg5[%c0_7, %c0_8] : memref<32x32xf32, #tpu.memory_space<vmem>>, vector<32x32xf32>
    %c0_9 = arith.constant 0 : index
    %c0_10 = arith.constant 0 : index
    %6 = vector.load %arg6[%c0_9, %c0_10] : memref<1x32xf32, #tpu.memory_space<vmem>>, vector<1x32xf32>
    %cst = arith.constant dense<0.000000e+00> : vector<16x32xf32>
    %7 = tpu.matmul %1, %4, %cst {dimension_numbers = #tpu.dot_dimension_numbers<[1], [0], [0], [1], [0, 0, 1, 1], [], []>} : vector<16x32xf32>, vector<32x32xf32>, vector<16x32xf32> -> vector<16x32xf32>
    %cst_11 = arith.constant dense<0.000000e+00> : vector<16x32xf32>
    %8 = tpu.matmul %3, %5, %cst_11 {dimension_numbers = #tpu.dot_dimension_numbers<[1], [0], [0], [1], [0, 0, 1, 1], [], []>} : vector<16x32xf32>, vector<32x32xf32>, vector<16x32xf32> -> vector<16x32xf32>
    %9 = arith.addf %7, %8 : vector<16x32xf32>
    %10 = vector.broadcast %6 : vector<1x32xf32> to vector<16x32xf32>
    %11 = arith.addf %9, %10 : vector<16x32xf32>
    %cst_12 = arith.constant 0.000000e+00 : f32
    %12 = vector.broadcast %cst_12 : f32 to vector<16x32xf32>
    %13 = arith.maximumf %11, %12 : vector<16x32xf32>
    %c0_13 = arith.constant 0 : index
    %c0_14 = arith.constant 0 : index
    %c0_15 = arith.constant 0 : index
    %c0_16 = arith.constant 0 : index
    %14 = vector.load %arg3[%c0_13, %c0_14, %c0_15, %c0_16] : memref<2x8x8x32xf32, #tpu.memory_space<vmem>>, vector<2x8x8x32xf32>
    %15 = vector.shape_cast %14 : vector<2x8x8x32xf32> to vector<16x8x32xf32>
    %16 = vector.shape_cast %13 : vector<16x32xf32> to vector<16x1x32xf32>
    %17 = vector.broadcast %16 : vector<16x1x32xf32> to vector<16x8x32xf32>
    %18 = arith.mulf %15, %17 : vector<16x8x32xf32>
    %cst_17 = arith.constant dense<0.000000e+00> : vector<16x8xf32>
    %19 = vector.multi_reduction <add>, %18, %cst_17 [2] : vector<16x8x32xf32> to vector<16x8xf32>
    %cst_18 = arith.constant dense<0xFF800000> : vector<16xf32>
    %20 = vector.multi_reduction <maximumf>, %19, %cst_18 [1] : vector<16x8xf32> to vector<16xf32>
    %21 = vector.shape_cast %20 : vector<16xf32> to vector<16x1xf32>
    %22 = vector.broadcast %21 : vector<16x1xf32> to vector<16x8xf32>
    %23 = arith.subf %19, %22 : vector<16x8xf32>
    %24 = math.exp %23 : vector<16x8xf32>
    %cst_19 = arith.constant dense<0.000000e+00> : vector<16xf32>
    %25 = vector.multi_reduction <add>, %24, %cst_19 [1] : vector<16x8xf32> to vector<16xf32>
    %26 = vector.shape_cast %25 : vector<16xf32> to vector<16x1xf32>
    %27 = math.log %26 : vector<16x1xf32>
    %28 = vector.broadcast %27 : vector<16x1xf32> to vector<16x8xf32>
    %29 = arith.subf %23, %28 : vector<16x8xf32>
    %30 = vector.shape_cast %29 : vector<16x8xf32> to vector<2x8x8xf32>
    %c0_20 = arith.constant 0 : index
    %c0_21 = arith.constant 0 : index
    %c0_22 = arith.constant 0 : index
    %31 = vector.load %arg7[%c0_20, %c0_21, %c0_22] : memref<2x8x8xf32, #tpu.memory_space<vmem>>, vector<2x8x8xf32>
    tpu.vector_store %arg7[%c0_20, %c0_21, %c0_22], %30 {strides = array<i32>} : memref<2x8x8xf32, #tpu.memory_space<vmem>>, vector<2x8x8xf32>,
    return
  }
  func.func @transform_0(%arg0: i32) -> (i32, i32, i32) {
    %c0_i32 = arith.constant 0 : i32
    %c0_i32_0 = arith.constant 0 : i32
    %c0_i32_1 = arith.constant 0 : i32
    return %arg0, %c0_i32, %c0_i32_0 : i32, i32, i32
  }
  func.func @transform_1(%arg0: i32) -> (i32, i32, i32) {
    %c0_i32 = arith.constant 0 : i32
    %c0_i32_0 = arith.constant 0 : i32
    %c0_i32_1 = arith.constant 0 : i32
    return %arg0, %c0_i32, %c0_i32_0 : i32, i32, i32
  }
  func.func @transform_2(%arg0: i32) -> (i32, i32, i32, i32) {
    %c0_i32 = arith.constant 0 : i32
    %c0_i32_0 = arith.constant 0 : i32
    %c0_i32_1 = arith.constant 0 : i32
    %c0_i32_2 = arith.constant 0 : i32
    return %arg0, %c0_i32, %c0_i32_0, %c0_i32_1 : i32, i32, i32, i32
  }
  func.func @transform_3(%arg0: i32) -> (i32, i32) {
    %c0_i32 = arith.constant 0 : i32
    %c0_i32_0 = arith.constant 0 : i32
    %c0_i32_1 = arith.constant 0 : i32
    return %c0_i32, %c0_i32_0 : i32, i32
  }
  func.func @transform_4(%arg0: i32) -> (i32, i32) {
    %c0_i32 = arith.constant 0 : i32
    %c0_i32_0 = arith.constant 0 : i32
    %c0_i32_1 = arith.constant 0 : i32
    return %c0_i32, %c0_i32_0 : i32, i32
  }
  func.func @transform_5(%arg0: i32) -> (i32, i32) {
    %c0_i32 = arith.constant 0 : i32
    %c0_i32_0 = arith.constant 0 : i32
    %c0_i32_1 = arith.constant 0 : i32
    return %c0_i32, %c0_i32_0 : i32, i32
  }
  func.func @transform_6(%arg0: i32) -> (i32, i32, i32) {
    %c0_i32 = arith.constant 0 : i32
    %c0_i32_0 = arith.constant 0 : i32
    %c0_i32_1 = arith.constant 0 : i32
    return %arg0, %c0_i32, %c0_i32_0 : i32, i32, i32
  }
}

</mosaic_0001>

<bundles_post_ra>
// kernel: tpu_custom_call.1
= control target key start
LH: loop header
LB: loop body
LE: loop exit
PB: predicated region body
PF: predicated region fallthrough
CT: control target
= control target key end

     0   :  { %11 = vsyncpa [#allocation5], 0  ;;  %s1828_s0 = inlined_call_operand.vmem [shape: f32[2,10,32], index: 0, kind: input, shape index: {}]   ;;  %s1829_s1 = inlined_call_operand.vmem [shape: f32[2,10,32], index: 1, kind: input, shape index: {}]   ;;  %s1830_s2 = inlined_call_operand.hbm [shape: f32[2,8,8,32], index: 2, kind: input, shape index: {}]   ;;  %s1831_s3 = inlined_call_operand.vmem [shape: f32[32,32], index: 3, kind: input, shape index: {}]   ;;  %s1832_s4 = inlined_call_operand.vmem [shape: f32[32,32], index: 4, kind: input, shape index: {}]   ;;  %s1833_s5 = inlined_call_operand.vmem [shape: f32[1,32], index: 5, kind: input, shape index: {}]   ;;  %s1834_s6 = inlined_call_operand.hbm [shape: f32[2,8,8], index: 6, kind: output, shape index: {}]  }
   0x1   :  { %12 = vsyncpa [#allocation6], 0  ;;  %v44_v0 = vld [vmem:[%s1828_s0] sm:$0xff]  ;;  %v46_v1 = vld [vmem:[%s1828_s0 + $0x10] sm:$0xff]  ;;  %s1374_s29 = smov [#allocation4]   ;;  %s1326_s9 = scalar_lea.hbm %s1830_s2, 2048 }
   0x2   :  { %v82_v2 = vld [vmem:[%s1829_s1] sm:$0xff]  ;;  %v84_v3 = vld [vmem:[%s1829_s1 + $0x10] sm:$0xff]  ;;  %s94_s30 = sshll.u32 %s1374_s29, 4  ;;  %p1327_p0 = scmp.ne.s32.totalorder %s1830_s2, %s1326_s9  ;;  %s95_s30 = int_to_ptr.vmem [resolvable:$true] %s94_s30 }
   0x3   :  { %p1330_p1 = scmp.lt.u32.totalorder %s1326_s9, %s1830_s2 }
   0x5   :  { %p1332_p2 = pnand %p1330_p1, %p1327_p0 }
   0x7   :  { %1335 = shalt.err (!%p1332_p2)
}
   0x8   :  { %s1336_s13 = scalar_lea.vmem %s95_s30, 2048  ;;  %p1341_p4 = scmp.lt.s32.totalorder %s95_s30, %s95_s30 }
   0x9   :  { %p1337_p3 = scmp.ne.s32.totalorder %s95_s30, %s1336_s13  ;;  %p1342_p5 = scmp.lt.s32.totalorder %s1336_s13, %s1336_s13 }
   0xb   :  { %p1343_p6 = por %p1342_p5, %p1341_p4 }
   0xd   :  { %p1344_p7 = pnand %p1343_p6, %p1337_p3 }
   0xf   :  { %1347 = shalt.err (!%p1344_p7)
}
  0x10   :  { %s1375_s1 = smov 128   ;;  %s1376_s14 = smov 8  }
  0x11   :  { %100 = dma.hbm_to_vmem [thread:$0]  %s1830_s2, 2048, %s95_s30, [#allocation5], %s1375_s1, %s1375_s1, %s1376_s14  }
  0x12   :  { %1370 = dma.done.wait [#allocation5], 2048  }
  0x13   :  { %1371 = vsyncadd [#allocation5], 4294965248  ;;  %vm127_vm0 = vcmask 261120   ;;  %v122_v4 = vld [vmem:[%s1832_s4] sm:$0xff]  ;;  %v123_v5 = vld [vmem:[%s1832_s4 + $0x8] sm:$0xff]  ;;  %v322_v18 = vlaneseq  ;;  %vm642_vm1 = vcmask 1041409  }
  0x14   :  { %1250 = vmatprep.mubr.msk.f32.mxu1 %vm127_vm0, %v82_v2  ;;  %1261 = vmatprep.mubr.msk.f32.mxu0 %vm127_vm0, %v44_v0  ;;  %v118_v6 = vld [vmem:[%s1831_s3] sm:$0xff]  ;;  %v1264_v7 = vpack.c.bf16 %v123_v5, %v122_v4  ;;  %v119_v8 = vld [vmem:[%s1831_s3 + $0x8] sm:$0xff]  ;;  %v124_v9 = vld [vmem:[%s1832_s4 + $0x10] sm:$0xff]  ;;  %v1377_v16 = vmov 1966171168   ;;  %vm644_vm2 = vcmask 1042434  }
  0x15   :  { %v125_v10 = vld [vmem:[%s1832_s4 + $0x18] sm:$0xff]  ;;  %v1272_v11 = vpack.c.bf16 %v119_v8, %v118_v6  ;;  %v120_v13 = vld [vmem:[%s1831_s3 + $0x10] sm:$0xff]  ;;  %v320_v17 = vunpack.c.l.s4 %v1377_v16  ;;  %v1471_v21 = vshrl.u32 %v322_v18, 7  ;;  %v1229_v22 = vld [vmem:[%s1833_s5] ss:$0 sm:$0xff]  ;;  %vm646_vm3 = vcmask 1043459  }
  0x16   :  { %v1268_v12 = vpack.c.bf16 %v125_v10, %v124_v9  ;;  %v121_v14 = vld [vmem:[%s1831_s3 + $0x18] sm:$0xff]  ;;  %1265 = vmatprep.subr.bf16.mxu1 %v1264_v7  ;;  %v308_v43 = vld [vmem:[#allocation4 + $0x40] sm:$0xff]  ;;  %v309_v50 = vld [vmem:[#allocation4 + $0x48] sm:$0xff]  ;;  %vm648_vm4 = vcmask 1044484   ;;  %vm650_vm5 = vcmask 1045509   ;;  %vm652_vm6 = vcmask 1046534  }
  0x17   :  { %v1276_v15 = vpack.c.bf16 %v121_v14, %v120_v13  ;;  %1273 = vmatprep.subr.bf16.mxu0 %v1272_v11  ;;  %1267 = vmatpush3.bf16.msra.mxu1 %v1264_v7  ;;  %v321_v20 = vunpack.c.0.s8 %v320_v17  ;;  %v1481_v35 = vsub.s32 0, %v1471_v21  ;;  %v300_v46 = vld [vmem:[#allocation4] sm:$0xff]  ;;  %v301_v55 = vld [vmem:[#allocation4 + $0x8] sm:$0xff]  ;;  %vm654_vm7 = vcmask 1047559   ;;  %s1379_s5 = smov [#allocation7]  }
  0x18   :  { %1275 = vmatpush3.bf16.msra.mxu0 %v1272_v11  ;;  %1269 = vmatprep.subr.bf16.mxu1 %v1268_v12  ;;  %vm665_vm8 = vcmask 64512   ;;  %s1205_s8 = sshll.u32 %s1379_s5, 4  ;;  %s1206_s8 = int_to_ptr.vmem [resolvable:$true] %s1205_s8 }
  0x19   :  { %1277 = vmatprep.subr.bf16.mxu0 %v1276_v15  ;;  %v1477_v29 = vsub.s32 %v321_v20, %v1471_v21  ;;  %s1348_s9 = scalar_lea.vmem %s1206_s8, 256  ;;  %p1353_p9 = scmp.lt.s32.totalorder %s1206_s8, %s1206_s8 }
  0x1a   :  { %p1349_p8 = scmp.ne.s32.totalorder %s1206_s8, %s1348_s9  ;;  %p1354_p10 = scmp.lt.s32.totalorder %s1348_s9, %s1348_s9 }
  0x1b   :  { %1271 = vmatpush3.bf16.msra.mxu1 %v1268_v12  ;;  %v312_v12 = vld [vmem:[#allocation4 + $0x60] sm:$0xff] }
  0x1c   :  { %1279 = vmatpush3.bf16.msra.mxu0 %v1276_v15  ;;  %v304_v15 = vld [vmem:[#allocation4 + $0x20] sm:$0xff]  ;;  %p1355_p11 = por %p1354_p10, %p1353_p9 }
  0x1e   :  { %1251 = vmatmul.mubr.msk.f32.vlgmr.msra.gmra.mrb[0].mxu1 %vm127_vm0, %v84_v3  ;;  %v302_v3 = vld [vmem:[#allocation4 + $0x10] sm:$0xff]  ;;  %p1356_p12 = pnand %p1355_p11, %p1349_p8 }
  0x1f   :  { %1262 = vmatmul.mubr.msk.f32.vlgmr.msra.gmra.mrb[0].mxu0 %vm127_vm0, %v46_v1  ;;  %v310_v1 = vld [vmem:[#allocation4 + $0x50] sm:$0xff] }
  0xf1   :  { %v1252_v19 = vpop.f32.mrb[0].mxu1 }
  0xf2   :  { %v1263_v23 = vpop.f32.mrb[0].mxu0  ;;  %v200_v24 = vpop.f32.mrb[1].mxu1 }
  0xf3   :  { %v287_v25 = vadd.f32 %v1263_v23, %v1252_v19  ;;  %v281_v26 = vpop.f32.mrb[1].mxu0 }
  0xf4   :  { %v282_v27 = vadd.f32 %v281_v26, %v200_v24  ;;  %v311_v24 = vld [vmem:[#allocation4 + $0x58] sm:$0xff] }
  0xf5   :  { %v297_v28 = vadd.f32 %v1229_v22, %v287_v25 }
  0xf6   :  { %v296_v30 = vadd.f32 %v1229_v22, %v282_v27  ;;  %v303_v27 = vld [vmem:[#allocation4 + $0x18] sm:$0xff] }
  0xf7   :  { %v299_v31 = vmax.f32 %v297_v28, 0.0 }
  0xf8   :  { %v298_v32 = vmax.f32 %v296_v30, 0.0 }
  0xf9   :  { %v367_v33 = vcombine.high %v299_v31, %v299_v31  ;;  %v374_v34 = vrot.slane %v299_v31, %v1477_v29 }
  0xfa   :  { %v318_v36 = vcombine.high %v298_v32, %v298_v32  ;;  %v325_v37 = vrot.slane %v298_v32, %v1477_v29 }
  0xfb   :  { %v382_v38 = vcombine.high %v374_v34, %v374_v34  ;;  %v390_v39 = vrot.slane %v374_v34, %v1477_v29  ;;  %v381_v40 = vrot.slane %v367_v33, %v1477_v29 }
  0xfc   :  { %v332_v41 = vrot.slane %v318_v36, %v1477_v29  ;;  %v333_v42 = vcombine.high %v325_v37, %v325_v37  ;;  %v341_v44 = vrot.slane %v325_v37, %v1477_v29  ;;  %v313_v36 = vld [vmem:[#allocation4 + $0x68] sm:$0xff] }
  0xfd   :  { %v451_v45 = vrot.slane %v390_v39, %v1481_v35  ;;  %v404_v47 = vrot.slane %v382_v38, %v1477_v29  ;;  %v412_v48 = vcombine.high %v390_v39, %v390_v39  ;;  %v397_v58 = vrot.slane %v381_v40, %v1477_v29  ;;  %v305_v39 = vld [vmem:[#allocation4 + $0x28] sm:$0xff] }
  0xfe   :  { %v419_v49 = vrot.slane %v341_v44, %v1481_v35  ;;  %v355_v51 = vrot.slane %v333_v42, %v1477_v29  ;;  %v363_v52 = vcombine.high %v341_v44, %v341_v44  ;;  %v348_v59 = vrot.slane %v332_v41, %v1477_v29 }
  0xff   :  { %v504_v53 = vmul.f32 %v451_v45, %v308_v43  ;;  %v455_v54 = vrot.slane %v404_v47, %v1481_v35  ;;  %v459_v62 = vrot.slane %v412_v48, %v1481_v35  ;;  %v467_v4 = vrot.slane %v397_v58, %v1481_v35  ;;  %v314_v45 = vld [vmem:[#allocation4 + $0x70] sm:$0xff] }
 0x100   :  { %v496_v56 = vmul.f32 %v419_v49, %v300_v46  ;;  %v423_v57 = vrot.slane %v355_v51, %v1481_v35  ;;  %v427_v2 = vrot.slane %v363_v52, %v1481_v35  ;;  %v435_v5 = vrot.slane %v348_v59, %v1481_v35  ;;  %v306_v48 = vld [vmem:[#allocation4 + $0x30] sm:$0xff] }
 0x101   :  { %v536_v60 = vsel %vm127_vm0, %v504_v53, 0.0  ;;  %v505_v61 = vmul.f32 %v455_v54, %v309_v50  ;;  %v506_v7 = vmul.f32 %v459_v62, %v310_v1  ;;  %v414_v8 = vcombine.high %v404_v47, %v404_v47  ;;  %v315_v54 = vld [vmem:[#allocation4 + $0x78] sm:$0xff] }
 0x102   :  { %537 = vadd.xlane.f32.xlu1 %v536_v60  ;;  %v512_v63 = vsel %vm127_vm0, %v496_v56, 0.0  ;;  %v497_v0 = vmul.f32 %v423_v57, %v301_v55  ;;  %v383_v9 = vcombine.high %v381_v40, %v381_v40  ;;  %v498_v11 = vmul.f32 %v427_v2, %v302_v3  ;;  %v307_v56 = vld [vmem:[#allocation4 + $0x38] sm:$0xff] }
 0x103   :  { %513 = vadd.xlane.f32.xlu0 %v512_v63  ;;  %v539_v6 = vsel %vm127_vm0, %v505_v61, 0.0  ;;  %v365_v13 = vcombine.high %v355_v51, %v355_v51  ;;  %v334_v14 = vcombine.high %v332_v41, %v332_v41  ;;  %v542_v16 = vsel %vm127_vm0, %v506_v7, 0.0 }
 0x104   :  { %v515_v10 = vsel %vm127_vm0, %v497_v0, 0.0  ;;  %v508_v17 = vmul.f32 %v467_v4, %v312_v12  ;;  %v463_v19 = vrot.slane %v414_v8, %v1481_v35  ;;  %v411_v20 = vrot.slane %v383_v9, %v1477_v29 }
 0x105   :  { %v518_v22 = vsel %vm127_vm0, %v498_v11, 0.0  ;;  %v500_v23 = vmul.f32 %v435_v5, %v304_v15  ;;  %v431_v25 = vrot.slane %v365_v13, %v1481_v35  ;;  %v362_v26 = vrot.slane %v334_v14, %v1477_v29 }
 0x106   :  { %540 = vadd.xlane.f32.xlu1 %v539_v6  ;;  %v548_v28 = vsel %vm127_vm0, %v508_v17, 0.0  ;;  %v507_v30 = vmul.f32 %v463_v19, %v311_v24  ;;  %v471_v31 = vrot.slane %v411_v20, %v1481_v35  ;;  %v413_v32 = vcombine.high %v397_v58, %v397_v58 }
 0x107   :  { %516 = vadd.xlane.f32.xlu0 %v515_v10  ;;  %v524_v33 = vsel %vm127_vm0, %v500_v23, 0.0  ;;  %v499_v34 = vmul.f32 %v431_v25, %v303_v27  ;;  %v439_v37 = vrot.slane %v362_v26, %v1481_v35  ;;  %v364_v38 = vcombine.high %v348_v59, %v348_v59 }
 0x108   :  { %v545_v29 = vsel %vm127_vm0, %v507_v30, 0.0  ;;  %v509_v40 = vmul.f32 %v471_v31, %v313_v36  ;;  %v475_v41 = vrot.slane %v413_v32, %v1481_v35  ;;  %v415_v42 = vcombine.high %v411_v20, %v411_v20 }
 0x109   :  { %v521_v43 = vsel %vm127_vm0, %v499_v34, 0.0  ;;  %v501_v44 = vmul.f32 %v439_v37, %v305_v39  ;;  %v443_v46 = vrot.slane %v364_v38, %v1481_v35  ;;  %v366_v47 = vcombine.high %v362_v26, %v362_v26 }
 0x10a   :  { %543 = vadd.xlane.f32.xlu1 %v542_v16  ;;  %v551_v49 = vsel %vm127_vm0, %v509_v40, 0.0  ;;  %v510_v50 = vmul.f32 %v475_v41, %v314_v45  ;;  %v479_v51 = vrot.slane %v415_v42, %v1481_v35  ;;  %v577_v6 = vand.u32 127, %v322_v18 }
 0x10b   :  { %519 = vadd.xlane.f32.xlu0 %v518_v22  ;;  %v527_v52 = vsel %vm127_vm0, %v501_v44, 0.0  ;;  %v502_v53 = vmul.f32 %v443_v46, %v306_v48  ;;  %v447_v55 = vrot.slane %v366_v47, %v1481_v35 }
 0x10c   :  { %v554_v57 = vsel %vm127_vm0, %v510_v50, 0.0  ;;  %v511_v58 = vmul.f32 %v479_v51, %v315_v54  ;;  %v1546_v9 = vsub.s32 %v577_v6, %v1471_v21  ;;  %v1378_v51 = vmov 0  }
 0x10d   :  { %v530_v59 = vsel %vm127_vm0, %v502_v53, 0.0  ;;  %v503_v60 = vmul.f32 %v447_v55, %v307_v56  ;;  %1289 = vset.pattern.permute.xlu0 %v1378_v51  ;;  %1288 = vset.pattern.permute.xlu1 %v1378_v51  ;;  %v1611_v53 = vsub.s32 1, %v1471_v21  ;;  %v1614_v54 = vsub.s32 5, %v1471_v21 }
 0x10e   :  { %549 = vadd.xlane.f32.xlu1 %v548_v28  ;;  %v557_v61 = vsel %vm127_vm0, %v511_v58, 0.0  ;;  %v1619_v58 = vsub.s32 2, %v1471_v21 }
 0x10f   :  { %525 = vadd.xlane.f32.xlu0 %v524_v33  ;;  %v533_v62 = vsel %vm127_vm0, %v503_v60, 0.0 }
 0x112   :  { %546 = vadd.xlane.f32.xlu1 %v545_v29 }
 0x113   :  { %522 = vadd.xlane.f32.xlu0 %v521_v43 }
 0x116   :  { %552 = vadd.xlane.f32.xlu1 %v551_v49 }
 0x117   :  { %528 = vadd.xlane.f32.xlu0 %v527_v52  ;;  %v1608_v52 = vsub.s32 4, %v1471_v21 }
 0x11a   :  { %555 = vadd.xlane.f32.xlu1 %v554_v57 }
 0x11b   :  { %531 = vadd.xlane.f32.xlu0 %v530_v59 }
 0x11e   :  { %558 = vadd.xlane.f32.xlu1 %v557_v61 }
 0x11f   :  { %534 = vadd.xlane.f32.xlu0 %v533_v62 }
 0x18f   :  { %v1526_v63 = vpop.xlane.xlu1 %537 }
 0x190   :  { %v1528_v0 = vpop.xlane.xlu0 %513  ;;  %v613_v14 = vrot.slane %v1526_v63, %v1546_v9 }
 0x191   :  { %v581_v19 = vrot.slane %v1528_v0, %v1546_v9 }
 0x193   :  { %v1530_v1 = vpop.xlane.xlu1 %540 }
 0x194   :  { %v1532_v2 = vpop.xlane.xlu0 %516  ;;  %v617_v11 = vrot.slane %v1530_v1, %v1546_v9 }
 0x195   :  { %v585_v12 = vrot.slane %v1532_v2, %v1546_v9 }
 0x196   :  { %v656_v22 = vsel %vm642_vm1, %v617_v11, %v613_v14  ;;  %v1632_v11 = vsub.s32 3, %v1471_v21 }
 0x197   :  { %v1534_v3 = vpop.xlane.xlu1 %543  ;;  %v643_v23 = vsel %vm642_vm1, %v585_v12, %v581_v19  ;;  %v1649_v19 = vsub.s32 7, %v1471_v21 }
 0x198   :  { %v1536_v4 = vpop.xlane.xlu0 %519  ;;  %v621_v13 = vrot.slane %v1534_v3, %v1546_v9 }
 0x199   :  { %v589_v15 = vrot.slane %v1536_v4, %v1546_v9 }
 0x19a   :  { %v657_v24 = vsel %vm644_vm2, %v621_v13, %v656_v22 }
 0x19b   :  { %v1538_v5 = vpop.xlane.xlu1 %549  ;;  %v645_v26 = vsel %vm644_vm2, %v589_v15, %v643_v23 }
 0x19c   :  { %v1541_v7 = vpop.xlane.xlu0 %525  ;;  %v629_v31 = vrot.slane %v1538_v5, %v1546_v9 }
 0x19d   :  { %v597_v36 = vrot.slane %v1541_v7, %v1546_v9 }
 0x19f   :  { %v1543_v8 = vpop.xlane.xlu1 %546 }
 0x1a0   :  { %v1548_v10 = vpop.xlane.xlu0 %522  ;;  %v625_v16 = vrot.slane %v1543_v8, %v1546_v9 }
 0x1a1   :  { %v593_v20 = vrot.slane %v1548_v10, %v1546_v9 }
 0x1a2   :  { %v658_v27 = vsel %vm646_vm3, %v625_v16, %v657_v24 }
 0x1a3   :  { %v1556_v18 = vpop.xlane.xlu1 %552  ;;  %v647_v32 = vsel %vm646_vm3, %v593_v20, %v645_v26  ;;  %v659_v39 = vsel %vm648_vm4, %v629_v31, %v658_v27 }
 0x1a4   :  { %v1564_v17 = vpop.xlane.xlu0 %528  ;;  %v633_v28 = vrot.slane %v1556_v18, %v1546_v9  ;;  %v649_v42 = vsel %vm648_vm4, %v597_v36, %v647_v32 }
 0x1a5   :  { %v601_v33 = vrot.slane %v1564_v17, %v1546_v9 }
 0x1a6   :  { %v660_v41 = vsel %vm650_vm5, %v633_v28, %v659_v39 }
 0x1a7   :  { %v1573_v25 = vpop.xlane.xlu1 %555  ;;  %v651_v45 = vsel %vm650_vm5, %v601_v33, %v649_v42 }
 0x1a8   :  { %v1579_v30 = vpop.xlane.xlu0 %531  ;;  %v637_v34 = vrot.slane %v1573_v25, %v1546_v9 }
 0x1a9   :  { %v605_v37 = vrot.slane %v1579_v30, %v1546_v9 }
 0x1aa   :  { %v661_v44 = vsel %vm652_vm6, %v637_v34, %v660_v41 }
 0x1ab   :  { %v559_v38 = vpop.xlane.xlu1 %558  ;;  %v653_v47 = vsel %vm652_vm6, %v605_v37, %v651_v45 }
 0x1ac   :  { %v641_v29 = vrot.slane %v559_v38, %v1546_v9  ;;  %v1594_v40 = vpop.xlane.xlu0 %534 }
 0x1ad   :  { %v609_v43 = vrot.slane %v1594_v40, %v1546_v9 }
 0x1ae   :  { %v662_v46 = vsel %vm654_vm7, %v641_v29, %v661_v44 }
 0x1af   :  { %v669_v48 = vsel %vm665_vm8, %v662_v46, -inf  ;;  %v655_v49 = vsel %vm654_vm7, %v609_v43, %v653_v47 }
 0x1b0   :  { %670 = vmax.xlane.f32.xlu1 %v669_v48  ;;  %v666_v50 = vsel %vm665_vm8, %v655_v49, -inf }
 0x1b1   :  { %667 = vmax.xlane.f32.xlu0 %v666_v50 }
 0x23d   :  { %v671_v55 = vpop.xlane.xlu1 %670 }
 0x23e   :  { %v709_v56 = vrot.slane %v671_v55, %v1481_v35  ;;  %v725_v57 = vrot.slane %v671_v55, %v1608_v52  ;;  %v713_v59 = vrot.slane %v671_v55, %v1611_v53  ;;  %v729_v61 = vrot.slane %v671_v55, %v1614_v54  ;;  %v1629_v6 = vpop.xlane.xlu0 %667 }
 0x23f   :  { %v717_v12 = vrot.slane %v671_v55, %v1619_v58  ;;  %v677_v16 = vrot.slane %v1629_v6, %v1481_v35  ;;  %v721_v20 = vrot.slane %v671_v55, %v1632_v11  ;;  %v737_v27 = vrot.slane %v671_v55, %v1649_v19 }
 0x240   :  { %v1623_v60 = vsub.f32 %v1526_v63, %v709_v56  ;;  %v1627_v62 = vsub.f32 %v1538_v5, %v725_v57  ;;  %v1636_v13 = vsub.f32 %v1530_v1, %v713_v59  ;;  %v1640_v63 = vsub.s32 6, %v1471_v21 }
 0x241   :  { %v1643_v15 = vsub.f32 %v1556_v18, %v729_v61  ;;  %v1653_v1 = vsub.f32 %v1534_v3, %v717_v12  ;;  %v1659_v24 = vsub.f32 %v1528_v0, %v677_v16  ;;  %v1662_v26 = vsub.f32 %v1543_v8, %v721_v20 }
 0x242   :  { %v786_v14 = vmul.f32 1.442695, %v1623_v60  ;;  %v794_v5 = vmul.f32 1.442695, %v1627_v62  ;;  %v788_v22 = vmul.f32 1.442695, %v1636_v13  ;;  %v733_v23 = vrot.slane %v671_v55, %v1640_v63 }
 0x243   :  { %v796_v18 = vmul.f32 1.442695, %v1643_v15  ;;  %v790_v21 = vmul.f32 1.442695, %v1653_v1  ;;  %v681_v3 = vrot.slane %v1629_v6, %v1611_v53  ;;  %v770_v31 = vmul.f32 1.442695, %v1659_v24 }
 0x244   :  { %1290 = vpow2.f32 %v786_v14  ;;  %v1669_v28 = vsub.f32 %v1573_v25, %v733_v23  ;;  %v792_v0 = vmul.f32 1.442695, %v1662_v26  ;;  %v685_v8 = vrot.slane %v1629_v6, %v1619_v58 }
 0x245   :  { %1292 = vpow2.f32 %v794_v5  ;;  %v1676_v32 = vsub.f32 %v1532_v2, %v681_v3  ;;  %v1678_v33 = vsub.f32 %v559_v38, %v737_v27  ;;  %v689_v37 = vrot.slane %v1629_v6, %v1632_v11 }
 0x246   :  { %1294 = vpow2.f32 %v788_v22  ;;  %v798_v34 = vmul.f32 1.442695, %v1669_v28  ;;  %v1684_v39 = vsub.f32 %v1536_v4, %v685_v8  ;;  %v693_v42 = vrot.slane %v1629_v6, %v1608_v52 }
 0x247   :  { %1296 = vpow2.f32 %v796_v18  ;;  %v772_v29 = vmul.f32 1.442695, %v1676_v32  ;;  %v800_v2 = vmul.f32 1.442695, %v1678_v33  ;;  %v1691_v43 = vsub.f32 %v1548_v10, %v689_v37 }
 0x248   :  { %1298 = vpow2.f32 %v790_v21  ;;  %v774_v44 = vmul.f32 1.442695, %v1684_v39  ;;  %v697_v46 = vrot.slane %v1629_v6, %v1614_v54  ;;  %v1697_v47 = vsub.f32 %v1541_v7, %v693_v42 }
 0x249   :  { %1300 = vpow2.f32 %v770_v31  ;;  %v776_v48 = vmul.f32 1.442695, %v1691_v43  ;;  %v701_v50 = vrot.slane %v1629_v6, %v1640_v63  ;;  %v705_v57 = vrot.slane %v1629_v6, %v1649_v19 }
 0x24a   :  { %1302 = vpow2.f32 %v792_v0  ;;  %v1703_v51 = vsub.f32 %v1564_v17, %v697_v46  ;;  %v778_v55 = vmul.f32 1.442695, %v1697_v47 }
 0x24b   :  { %1304 = vpow2.f32 %v798_v34  ;;  %v1709_v59 = vsub.f32 %v1579_v30, %v701_v50  ;;  %v1713_v17 = vsub.f32 %v1594_v40, %v705_v57 }
 0x24c   :  { %1306 = vpow2.f32 %v772_v29  ;;  %v780_v61 = vmul.f32 1.442695, %v1703_v51 }
 0x24d   :  { %1308 = vpow2.f32 %v800_v2  ;;  %v782_v14 = vmul.f32 1.442695, %v1709_v59  ;;  %v784_v16 = vmul.f32 1.442695, %v1713_v17 }
 0x24e   :  { %v1291_v36 = vpop.eup %1290  ;;  %1310 = vpow2.f32 %v774_v44 }
 0x24f   :  { %v1293_v25 = vpop.eup %1292  ;;  %843 = vperm.xlu1 %1288, %v1291_v36   ;;  %1312 = vpow2.f32 %v776_v48 }
 0x250   :  { %855 = vperm.xlu0 %1289, %v1293_v25   ;;  %v1295_v38 = vpop.eup %1294  ;;  %1314 = vpow2.f32 %v778_v55 }
 0x251   :  { %v1297_v41 = vpop.eup %1296  ;;  %1316 = vpow2.f32 %v780_v61 }
 0x252   :  { %v1299_v4 = vpop.eup %1298  ;;  %1318 = vpow2.f32 %v782_v14 }
 0x253   :  { %846 = vperm.xlu1 %1288, %v1295_v38   ;;  %v1301_v45 = vpop.eup %1300  ;;  %1320 = vpow2.f32 %v784_v16 }
 0x254   :  { %858 = vperm.xlu0 %1289, %v1297_v41   ;;  %v1303_v10 = vpop.eup %1302 }
 0x255   :  { %v1305_v49 = vpop.eup %1304 }
 0x256   :  { %v1307_v56 = vpop.eup %1306 }
 0x257   :  { %849 = vperm.xlu1 %1288, %v1299_v4   ;;  %v1309_v7 = vpop.eup %1308 }
 0x258   :  { %819 = vperm.xlu0 %1289, %v1301_v45   ;;  %v1311_v12 = vpop.eup %1310 }
 0x259   :  { %v1313_v5 = vpop.eup %1312 }
 0x25a   :  { %v1315_v6 = vpop.eup %1314 }
 0x25b   :  { %852 = vperm.xlu1 %1288, %v1303_v10   ;;  %v1317_v30 = vpop.eup %1316 }
 0x25c   :  { %861 = vperm.xlu0 %1289, %v1305_v49   ;;  %v1319_v20 = vpop.eup %1318 }
 0x25d   :  { %v1321_v22 = vpop.eup %1320 }
 0x25f   :  { %822 = vperm.xlu1 %1288, %v1307_v56  }
 0x260   :  { %864 = vperm.xlu0 %1289, %v1309_v7  }
 0x263   :  { %825 = vperm.xlu1 %1288, %v1311_v12  }
 0x267   :  { %828 = vperm.xlu1 %1288, %v1313_v5  }
 0x26b   :  { %831 = vperm.xlu1 %1288, %v1315_v6  }
 0x26f   :  { %834 = vperm.xlu1 %1288, %v1317_v30  }
 0x273   :  { %837 = vperm.xlu1 %1288, %v1319_v20  }
 0x277   :  { %840 = vperm.xlu1 %1288, %v1321_v22  }
 0x2ce   :  { %v844_v23 = vpop.permute.xlu1 %843 }
 0x2cf   :  { %v856_v40 = vpop.permute.xlu0 %855  ;;  %v901_v8 = vrot.slane %v844_v23, %v1546_v9 }
 0x2d0   :  { %v917_v29 = vrot.slane %v856_v40, %v1546_v9 }
 0x2d2   :  { %v847_v18 = vpop.permute.xlu1 %846 }
 0x2d3   :  { %v859_v21 = vpop.permute.xlu0 %858  ;;  %v905_v27 = vrot.slane %v847_v18, %v1546_v9 }
 0x2d4   :  { %v921_v38 = vrot.slane %v859_v21, %v1546_v9 }
 0x2d5   :  { %v937_v36 = vsel %vm642_vm1, %v905_v27, %v901_v8 }
 0x2d6   :  { %v850_v3 = vpop.permute.xlu1 %849 }
 0x2d7   :  { %v820_v31 = vpop.permute.xlu0 %819  ;;  %v909_v0 = vrot.slane %v850_v3, %v1546_v9 }
 0x2d8   :  { %v869_v14 = vrot.slane %v820_v31, %v1546_v9 }
 0x2d9   :  { %v938_v2 = vsel %vm644_vm2, %v909_v0, %v937_v36 }
 0x2da   :  { %v853_v34 = vpop.permute.xlu1 %852 }
 0x2db   :  { %v913_v25 = vrot.slane %v853_v34, %v1546_v9  ;;  %v862_v37 = vpop.permute.xlu0 %861 }
 0x2dc   :  { %v925_v44 = vrot.slane %v862_v37, %v1546_v9 }
 0x2dd   :  { %v939_v41 = vsel %vm646_vm3, %v913_v25, %v938_v2 }
 0x2de   :  { %v940_v42 = vsel %vm648_vm4, %v917_v29, %v939_v41  ;;  %v823_v4 = vpop.permute.xlu1 %822 }
 0x2df   :  { %v865_v45 = vpop.permute.xlu0 %864  ;;  %v941_v46 = vsel %vm650_vm5, %v921_v38, %v940_v42  ;;  %v873_v61 = vrot.slane %v823_v4, %v1546_v9 }
 0x2e0   :  { %v929_v48 = vrot.slane %v865_v45, %v1546_v9  ;;  %v942_v10 = vsel %vm652_vm6, %v925_v44, %v941_v46 }
 0x2e1   :  { %v930_v30 = vsel %vm642_vm1, %v873_v61, %v869_v14 }
 0x2e2   :  { %v826_v49 = vpop.permute.xlu1 %825  ;;  %v943_v50 = vsel %vm654_vm7, %v929_v48, %v942_v10 }
 0x2e3   :  { %v949_v55 = vsel %vm665_vm8, %v943_v50, 0.0  ;;  %v877_v12 = vrot.slane %v826_v49, %v1546_v9 }
 0x2e4   :  { %950 = vadd.xlane.f32.xlu0 %v949_v55 }
 0x2e5   :  { %v931_v22 = vsel %vm644_vm2, %v877_v12, %v930_v30 }
 0x2e6   :  { %v829_v56 = vpop.permute.xlu1 %828 }
 0x2e7   :  { %v881_v5 = vrot.slane %v829_v56, %v1546_v9 }
 0x2e9   :  { %v932_v40 = vsel %vm646_vm3, %v881_v5, %v931_v22 }
 0x2ea   :  { %v832_v7 = vpop.permute.xlu1 %831 }
 0x2eb   :  { %v885_v16 = vrot.slane %v832_v7, %v1546_v9 }
 0x2ed   :  { %v933_v18 = vsel %vm648_vm4, %v885_v16, %v932_v40 }
 0x2ee   :  { %v835_v57 = vpop.permute.xlu1 %834 }
 0x2ef   :  { %v889_v20 = vrot.slane %v835_v57, %v1546_v9 }
 0x2f1   :  { %v934_v3 = vsel %vm650_vm5, %v889_v20, %v933_v18 }
 0x2f2   :  { %v838_v6 = vpop.permute.xlu1 %837 }
 0x2f3   :  { %v893_v23 = vrot.slane %v838_v6, %v1546_v9 }
 0x2f5   :  { %v935_v31 = vsel %vm652_vm6, %v893_v23, %v934_v3 }
 0x2f6   :  { %v841_v21 = vpop.permute.xlu1 %840 }
 0x2f7   :  { %v897_v27 = vrot.slane %v841_v21, %v1546_v9 }
 0x2f9   :  { %v936_v0 = vsel %vm654_vm7, %v897_v27, %v935_v31 }
 0x2fa   :  { %v946_v8 = vsel %vm665_vm8, %v936_v0, 0.0 }
 0x2fb   :  { %947 = vadd.xlane.f32.xlu1 %v946_v8 }
 0x371   :  { %v951_v34 = vpop.xlane.xlu0 %950 }
 0x372   :  { %1322 = vlog2.f32 %v951_v34 }
 0x37c   :  { %v1323_v36 = vpop.eup %1322 }
 0x37d   :  { %v955_v25 = vmul.f32 0.6931472, %v1323_v36 }
 0x37f   :  { %v997_v37 = vrot.slane %v955_v25, %v1611_v53  ;;  %v993_v29 = vrot.slane %v955_v25, %v1481_v35  ;;  %v1001_v41 = vrot.slane %v955_v25, %v1619_v58  ;;  %v1005_v44 = vrot.slane %v955_v25, %v1632_v11 }
 0x380   :  { %v1009_v46 = vrot.slane %v955_v25, %v1608_v52  ;;  %v1017_v56 = vrot.slane %v955_v25, %v1640_v63  ;;  %v1021_v57 = vrot.slane %v955_v25, %v1649_v19 }
 0x381   :  { %v1047_v2 = vsub.f32 %v1636_v13, %v997_v37  ;;  %v1046_v38 = vsub.f32 %v1623_v60, %v993_v29  ;;  %v1048_v42 = vsub.f32 %v1653_v1, %v1001_v41  ;;  %v1049_v45 = vsub.f32 %v1662_v26, %v1005_v44 }
 0x382   :  { %v1050_v13 = vsub.f32 %v1627_v62, %v1009_v46  ;;  %v1013_v60 = vrot.slane %v955_v25, %v1614_v54  ;;  %v1052_v7 = vsub.f32 %v1669_v28, %v1017_v56 }
 0x383   :  { %1098 = vperm.xlu0 %1289, %v1047_v2   ;;  %1095 = vperm.xlu1 %1288, %v1046_v38  }
 0x384   :  { %v1051_v48 = vsub.f32 %v1643_v15, %v1013_v60 }
 0x387   :  { %1101 = vperm.xlu0 %1289, %v1048_v42  }
 0x388   :  { %v948_v4 = vpop.xlane.xlu1 %947 }
 0x389   :  { %1324 = vlog2.f32 %v948_v4 }
 0x38b   :  { %1104 = vperm.xlu0 %1289, %v1049_v45  }
 0x38f   :  { %1107 = vperm.xlu0 %1289, %v1050_v13  }
 0x393   :  { %v1325_v10 = vpop.eup %1324  ;;  %1110 = vperm.xlu0 %1289, %v1051_v48  }
 0x394   :  { %v953_v1 = vmul.f32 0.6931472, %v1325_v10 }
 0x396   :  { %v961_v49 = vrot.slane %v953_v1, %v1481_v35  ;;  %v965_v50 = vrot.slane %v953_v1, %v1611_v53  ;;  %v969_v62 = vrot.slane %v953_v1, %v1619_v58  ;;  %v973_v35 = vrot.slane %v953_v1, %v1632_v11 }
 0x397   :  { %v1053_v53 = vsub.f32 %v1678_v33, %v1021_v57  ;;  %v981_v28 = vrot.slane %v953_v1, %v1614_v54  ;;  %v985_v61 = vrot.slane %v953_v1, %v1640_v63  ;;  %v989_v33 = vrot.slane %v953_v1, %v1649_v19 }
 0x398   :  { %v1038_v55 = vsub.f32 %v1659_v24, %v961_v49  ;;  %v1039_v26 = vsub.f32 %v1676_v32, %v965_v50  ;;  %v1040_v15 = vsub.f32 %v1684_v39, %v969_v62  ;;  %v1041_v24 = vsub.f32 %v1691_v43, %v973_v35 }
 0x399   :  { %v977_v32 = vrot.slane %v953_v1, %v1608_v52  ;;  %v1043_v39 = vsub.f32 %v1703_v51, %v981_v28  ;;  %v1044_v11 = vsub.f32 %v1709_v59, %v985_v61  ;;  %v1045_v43 = vsub.f32 %v1713_v17, %v989_v33 }
 0x39a   :  { %1071 = vperm.xlu0 %1289, %v1038_v55   ;;  %1074 = vperm.xlu1 %1288, %v1039_v26  }
 0x39b   :  { %v1042_v58 = vsub.f32 %v1697_v47, %v977_v32 }
 0x39e   :  { %1113 = vperm.xlu0 %1289, %v1052_v7   ;;  %1077 = vperm.xlu1 %1288, %v1040_v15  }
 0x3a2   :  { %1116 = vperm.xlu0 %1289, %v1053_v53   ;;  %1080 = vperm.xlu1 %1288, %v1041_v24  }
 0x3a6   :  { %1083 = vperm.xlu1 %1288, %v1042_v58  }
 0x3aa   :  { %1086 = vperm.xlu1 %1288, %v1043_v39  }
 0x3ae   :  { %1089 = vperm.xlu1 %1288, %v1044_v11  }
 0x3b2   :  { %1092 = vperm.xlu1 %1288, %v1045_v43  }
 0x402   :  { %v1099_v52 = vpop.permute.xlu0 %1098  ;;  %v1096_v5 = vpop.permute.xlu1 %1095 }
 0x403   :  { %v1157_v51 = vrot.slane %v1099_v52, %v1546_v9  ;;  %v1153_v63 = vrot.slane %v1096_v5, %v1546_v9 }
 0x405   :  { %v1189_v22 = vsel %vm642_vm1, %v1157_v51, %v1153_v63 }
 0x406   :  { %v1102_v12 = vpop.permute.xlu0 %1101 }
 0x407   :  { %v1161_v59 = vrot.slane %v1102_v12, %v1546_v9 }
 0x409   :  { %v1190_v40 = vsel %vm644_vm2, %v1161_v59, %v1189_v22 }
 0x40a   :  { %v1105_v14 = vpop.permute.xlu0 %1104 }
 0x40b   :  { %v1165_v19 = vrot.slane %v1105_v14, %v1546_v9 }
 0x40d   :  { %v1191_v21 = vsel %vm646_vm3, %v1165_v19, %v1190_v40 }
 0x40e   :  { %v1108_v47 = vpop.permute.xlu0 %1107 }
 0x40f   :  { %v1169_v30 = vrot.slane %v1108_v47, %v1546_v9 }
 0x411   :  { %v1192_v3 = vsel %vm648_vm4, %v1169_v30, %v1191_v21 }
 0x412   :  { %v1111_v54 = vpop.permute.xlu0 %1110 }
 0x413   :  { %v1173_v23 = vrot.slane %v1111_v54, %v1546_v9 }
 0x415   :  { %v1193_v0 = vsel %vm650_vm5, %v1173_v23, %v1192_v3 }
 0x419   :  { %v1072_v16 = vpop.permute.xlu0 %1071  ;;  %v1075_v6 = vpop.permute.xlu1 %1074 }
 0x41a   :  { %v1121_v29 = vrot.slane %v1072_v16, %v1546_v9  ;;  %v1125_v2 = vrot.slane %v1075_v6, %v1546_v9 }
 0x41c   :  { %v1182_v4 = vsel %vm642_vm1, %v1125_v2, %v1121_v29 }
 0x41d   :  { %v1114_v17 = vpop.permute.xlu0 %1113  ;;  %v1078_v20 = vpop.permute.xlu1 %1077 }
 0x41e   :  { %v1177_v18 = vrot.slane %v1114_v17, %v1546_v9  ;;  %v1129_v38 = vrot.slane %v1078_v20, %v1546_v9 }
 0x420   :  { %v1194_v34 = vsel %vm652_vm6, %v1177_v18, %v1193_v0  ;;  %v1183_v46 = vsel %vm644_vm2, %v1129_v38, %v1182_v4 }
 0x421   :  { %v1117_v27 = vpop.permute.xlu0 %1116  ;;  %v1081_v31 = vpop.permute.xlu1 %1080 }
 0x422   :  { %v1181_v8 = vrot.slane %v1117_v27, %v1546_v9  ;;  %v1133_v41 = vrot.slane %v1081_v31, %v1546_v9 }
 0x424   :  { %v1195_v36 = vsel %vm654_vm7, %v1181_v8, %v1194_v34  ;;  %v1184_v60 = vsel %vm646_vm3, %v1133_v41, %v1183_v46 }
 0x425   :  { %1199 = vst.msk [vmem:[#allocation7 + $0x8] sm:$0xff] %vm665_vm8, %v1195_v36  ;;  %v1084_v25 = vpop.permute.xlu1 %1083 }
 0x426   :  { %v1137_v42 = vrot.slane %v1084_v25, %v1546_v9 }
 0x428   :  { %v1185_v48 = vsel %vm648_vm4, %v1137_v42, %v1184_v60 }
 0x429   :  { %v1087_v37 = vpop.permute.xlu1 %1086 }
 0x42a   :  { %v1141_v45 = vrot.slane %v1087_v37, %v1546_v9 }
 0x42c   :  { %v1186_v1 = vsel %vm650_vm5, %v1141_v45, %v1185_v48 }
 0x42d   :  { %v1090_v44 = vpop.permute.xlu1 %1089 }
 0x42e   :  { %v1145_v13 = vrot.slane %v1090_v44, %v1546_v9 }
 0x430   :  { %v1187_v50 = vsel %vm652_vm6, %v1145_v13, %v1186_v1 }
 0x431   :  { %v1093_v10 = vpop.permute.xlu1 %1092 }
 0x432   :  { %v1149_v49 = vrot.slane %v1093_v10, %v1546_v9 }
 0x434   :  { %v1188_v55 = vsel %vm654_vm7, %v1149_v49, %v1187_v50 }
 0x435   :  { %1198 = vst.msk [vmem:[#allocation7] sm:$0xff] %vm665_vm8, %v1188_v55 }
 0x436   :  { %1359 = shalt.err (!%p1356_p12)
}
 0x437   :  { %s1360_s0 = scalar_lea.hbm %s1834_s6, 256 }
 0x438   :  { %p1361_p13 = scmp.ne.s32.totalorder %s1834_s6, %s1360_s0  ;;  %p1364_p0 = scmp.lt.u32.totalorder %s1360_s0, %s1834_s6 }
 0x43a   :  { %p1366_p1 = pnand %p1364_p0, %p1361_p13 }
 0x43c   :  { %1369 = shalt.err (!%p1366_p1)
}
 0x43d   :  { %1211 = dma.vmem_to_hbm [thread:$0]  %s1206_s8, 256, %s1834_s6, [#allocation6], %s1375_s1, %s1375_s1, %s1376_s14  }
 0x43e   :  { %1372 = dma.done.wait [#allocation6], 256  }
 0x43f   :  { %1373 = vsyncadd [#allocation6], 4294967040 }
 0x440   :  { %1215 = vsyncpa [#allocation5], 1 }
 0x441   :  { %1216 = vsyncpa [#allocation6], 1 }

</bundles_post_ra>
